<compile_context>
chip_gen: v7x
topology: tpu7x:2x2x1
jax: 0.10.0
libtpu: 0.0.40
codegen_flags: <defaults>
</compile_context>

<pallas_src>
import functools

import jax
import jax.numpy as jnp
from jax import lax
from jax.experimental import pallas as pl
from jax.experimental.pallas import tpu as pltpu


# ----------------------------- math helpers ---------------------------------
def _elu(v):
    # F.elu, alpha=1 (stable: exp only sees non-positive args)
    return jnp.where(v > 0, v, jnp.exp(jnp.minimum(v, 0.0)) - 1.0)


# ------------------------------- kernel --------------------------------------
def _spatial_conv_res_kernel(xe_ref, x_ref, wdw_ref, wsc_ref, shifts_ref, o_ref,
                             *, W, HW, shortcut_conv):
    """Per-batch body.

    xe_ref     : (b1, Hp*W)  reflection-padded input, channels pre-expanded to the
                 grouped-conv output channel order (channel o holds input channel o//g).
    x_ref      : (Cin, H*W)  un-padded input (shortcut path).
    wdw_ref    : (b1, 16)    depthwise (16,1) kernels, BN1 scale pre-folded.
    wsc_ref    : (b1, Cin)   1x1 shortcut conv weight, BN2 scale pre-folded.
    shifts_ref : (b1, 2)     [:,0] = BN1 shift, [:,1] = BN2 shift.
    o_ref      : (b1, H*W)   output slab.
    """
    xe = xe_ref[...]                          # (b1, HpW)
    wdw = wdw_ref[...]                        # (b1, K)
    K = wdw.shape[1]

    # Depthwise (16,1) conv along H on the flat padded slab: shifting H by k is a static
    # lane slice at offset k*W.  16 VPU FMAs on (b1, H*W); the lane realignments go to
    # the (idle) XLU slot.  BN1 scale is already folded into wdw.
    acc = wdw[:, 0:1] * xe[:, 0:HW]
    for k in range(1, K):
        acc = acc + wdw[:, k:k + 1] * xe[:, k * W:k * W + HW]
    dw = _elu(acc + shifts_ref[:, 0:1])       # BN1 shift + ELU
    # TODO(synk): nn.Dropout(0.25) is the identity in eval mode; training-mode masks are
    # not reproduced here.

    x = x_ref[...]                            # (Cin, HW)
    if shortcut_conv:
        # 1x1 conv with contraction depth Cin (tiny) -> broadcast FMAs on the VPU rather
        # than a near-empty MXU pass.  BN2 scale is folded into wsc.
        wsc = wsc_ref[...]                    # (b1, Cin)
        Cin = wsc.shape[1]
        sc = wsc[:, 0:1] * x[0:1, :]
        for c in range(1, Cin):
            sc = sc + wsc[:, c:c + 1] * x[c:c + 1, :]
        sc = _elu(sc + shifts_ref[:, 1:2])    # BN2 shift + ELU
    else:
        sc = x                                # identity shortcut (Cin == b1)

    o_ref[...] = dw + sc


# ------------------------------- wrapper --------------------------------------
def spatial_conv_res_forward(x, params):
    B, Cin, H, W = x.shape
    b1, K = params['w_dw'].shape
    assert K == 16
    assert b1 % Cin == 0, "grouped conv requires out_channels % in_channels == 0"
    assert H > 8, "ReflectionPad2d((0,0,8,7)) requires H >= 9"
    g = b1 // Cin
    Hp = H + 15                               # top pad 8, bottom pad 7
    HW, HpW = H * W, Hp * W
    eps = 1e-5

    # Reflection pad along H, expand channels to grouped-conv output order, flatten to
    # lane-dense slabs (layout plumbing only; all arithmetic happens in the kernel).
    x_pad = jnp.pad(x, ((0, 0), (0, 0), (8, 7), (0, 0)), mode='reflect')
    x_exp = jnp.repeat(x_pad, g, axis=1).reshape(B, b1, HpW).astype(jnp.float32)
    x_flat = x.reshape(B, Cin, HW).astype(jnp.float32)

    # Fold BN (eval) scales into the adjacent conv weights; pack the remaining shifts
    # into a single small constant (fewer per-step DMAs / BlockSpecs).
    bn1_scale = params['bn1_gamma'] / jnp.sqrt(params['bn1_var'] + eps)
    bn1_shift = params['bn1_beta'] - params['bn1_mean'] * bn1_scale
    w_dw = (params['w_dw'] * bn1_scale[:, None]).astype(jnp.float32)       # (b1, K)

    shortcut_conv = (Cin != b1)
    if shortcut_conv:
        bn2_scale = params['bn2_gamma'] / jnp.sqrt(params['bn2_var'] + eps)
        bn2_shift = params['bn2_beta'] - params['bn2_mean'] * bn2_scale
        w_sc = (params['w_sc'] * bn2_scale[:, None]).astype(jnp.float32)   # (b1, Cin)
    else:
        w_sc = jnp.zeros((b1, Cin), jnp.float32)
        bn2_shift = jnp.zeros((b1,), jnp.float32)
    shifts = jnp.stack([bn1_shift, bn2_shift], axis=1).astype(jnp.float32)  # (b1, 2)

    kernel = functools.partial(_spatial_conv_res_kernel,
                               W=W, HW=HW, shortcut_conv=shortcut_conv)

    in_specs = [
        pl.BlockSpec((None, b1, HpW), lambda b: (b, 0, 0)),
        pl.BlockSpec((None, Cin, HW), lambda b: (b, 0, 0)),
        pl.BlockSpec((b1, K), lambda b: (0, 0)),
        pl.BlockSpec((b1, Cin), lambda b: (0, 0)),
        pl.BlockSpec((b1, 2), lambda b: (0, 0)),
    ]
    out_specs = pl.BlockSpec((None, b1, HW), lambda b: (b, 0, 0))

    out_flat = pl.pallas_call(
        kernel,
        out_shape=jax.ShapeDtypeStruct((B, b1, HW), jnp.float32),
        grid=(B,),
        in_specs=in_specs,
        out_specs=out_specs,
        compiler_params=pltpu.CompilerParams(dimension_semantics=("parallel",)),
    )(x_exp, x_flat, w_dw, w_sc, shifts)
    return out_flat.reshape(B, b1, H, W)


# -------------------------- pure-JAX reference --------------------------------
def reference_forward(x, params):
    B, Cin, H, W = x.shape
    b1, K = params['w_dw'].shape
    eps = 1e-5
    xp = jnp.pad(x, ((0, 0), (0, 0), (8, 7), (0, 0)), mode='reflect')
    w4 = params['w_dw'][:, None, :, None]                    # OIHW = (b1, 1, 16, 1)
    conv = lax.conv_general_dilated(
        xp, w4, window_strides=(1, 1), padding='VALID',
        dimension_numbers=('NCHW', 'OIHW', 'NCHW'),
        feature_group_count=Cin, precision=lax.Precision.HIGHEST)
    s1 = params['bn1_gamma'] / jnp.sqrt(params['bn1_var'] + eps)
    t1 = params['bn1_beta'] - params['bn1_mean'] * s1
    seq = _elu(conv * s1[None, :, None, None] + t1[None, :, None, None])
    if Cin != b1:
        sc = jnp.einsum('oc,bchw->bohw', params['w_sc'], x,
                        precision=lax.Precision.HIGHEST)
        s2 = params['bn2_gamma'] / jnp.sqrt(params['bn2_var'] + eps)
        t2 = params['bn2_beta'] - params['bn2_mean'] * s2
        sc = _elu(sc * s2[None, :, None, None] + t2[None, :, None, None])
    else:
        sc = x
    return seq + sc


# ------------------------------ parameters ------------------------------------
def init_params(key, Cin, b1, K=16):
    ks = jax.random.split(key, 10)
    w = lambda k, shape, s=0.2: (s * jax.random.normal(k, shape)).astype(jnp.float32)
    # TODO(synk): BatchNorm2d layers are folded in eval mode using running statistics;
    # training-mode batch statistics are not reproduced.
    return dict(
        w_dw=w(ks[0], (b1, K)),                        # grouped (16,1) conv, bias=False
        w_sc=w(ks[1], (b1, Cin)),                      # shortcut 1x1 conv, bias=False
        bn1_gamma=1.0 + w(ks[2], (b1,), 0.1),
        bn1_beta=w(ks[3], (b1,), 0.05),
        bn1_mean=w(ks[4], (b1,), 0.1),
        bn1_var=jnp.abs(1.0 + w(ks[5], (b1,), 0.1)),
        bn2_gamma=1.0 + w(ks[6], (b1,), 0.1),
        bn2_beta=w(ks[7], (b1,), 0.05),
        bn2_mean=w(ks[8], (b1,), 0.1),
        bn2_var=jnp.abs(1.0 + w(ks[9], (b1,), 0.1)),
    )


# --------------------------------- main ---------------------------------------
if __name__ == "__main__":
    B, Cin, H, W = 2, 4, 16, 16
    b1 = 8                                     # != in_channels -> shortcut conv active
    root = jax.random.PRNGKey(0)
    kx, kp = jax.random.split(root)
    x = jax.random.normal(kx, (B, Cin, H, W), jnp.float32)
    params = init_params(kp, Cin, b1)

    out = spatial_conv_res_forward(x, params)
    out = jax.block_until_ready(out)
    assert out.shape == (B, b1, H, W), out.shape

    ref = reference_forward(x, params)
    err = float(jnp.max(jnp.abs(out - ref)))
    assert err < 1e-3, f"max abs err {err}"
    print("KERNEL_OK")
</pallas_src>

<mosaic_0001>
module attributes {stable_mosaic.version = 11 : i64} {
  func.func @_spatial_conv_res_kernel(%arg0: i32, %arg1: memref<1x8x496xf32, #tpu.memory_space<vmem>>, %arg2: memref<1x4x256xf32, #tpu.memory_space<vmem>>, %arg3: memref<8x16xf32, #tpu.memory_space<vmem>>, %arg4: memref<8x4xf32, #tpu.memory_space<vmem>>, %arg5: memref<8x2xf32, #tpu.memory_space<vmem>>, %arg6: memref<1x8x256xf32, #tpu.memory_space<vmem>>) attributes {dimension_semantics = [#tpu.dimension_semantics<parallel>], iteration_bounds = array<i64: 2>, scalar_prefetch = 0 : i64, scratch_operands = 0 : i64, tpu.core_type = #tpu.core_type<tc>, window_params = [{transform_indices = @transform_0, window_bounds = array<i64: 1, 8, 496>}, {transform_indices = @transform_1, window_bounds = array<i64: 1, 4, 256>}, {pipeline_mode = #tpu.pipeline_mode<synchronous>, transform_indices = @transform_2, window_bounds = array<i64: 8, 16>}, {pipeline_mode = #tpu.pipeline_mode<synchronous>, transform_indices = @transform_3, window_bounds = array<i64: 8, 4>}, {pipeline_mode = #tpu.pipeline_mode<synchronous>, transform_indices = @transform_4, window_bounds = array<i64: 8, 2>}, {transform_indices = @transform_5, window_bounds = array<i64: 1, 8, 256>}]} {
    %c0 = arith.constant 0 : index
    %c0_0 = arith.constant 0 : index
    %c0_1 = arith.constant 0 : index
    %0 = vector.load %arg1[%c0, %c0_0, %c0_1] : memref<1x8x496xf32, #tpu.memory_space<vmem>>, vector<1x8x496xf32>
    %1 = vector.shape_cast %0 : vector<1x8x496xf32> to vector<8x496xf32>
    %c0_2 = arith.constant 0 : index
    %c0_3 = arith.constant 0 : index
    %2 = vector.load %arg3[%c0_2, %c0_3] : memref<8x16xf32, #tpu.memory_space<vmem>>, vector<8x16xf32>
    %3 = vector.extract_strided_slice %2 {offsets = [0, 0], sizes = [8, 1], strides = [1, 1]} : vector<8x16xf32> to vector<8x1xf32>
    %4 = vector.extract_strided_slice %1 {offsets = [0, 0], sizes = [8, 256], strides = [1, 1]} : vector<8x496xf32> to vector<8x256xf32>
    %5 = vector.broadcast %3 : vector<8x1xf32> to vector<8x256xf32>
    %6 = arith.mulf %5, %4 : vector<8x256xf32>
    %7 = vector.extract_strided_slice %2 {offsets = [0, 1], sizes = [8, 1], strides = [1, 1]} : vector<8x16xf32> to vector<8x1xf32>
    %8 = vector.extract_strided_slice %1 {offsets = [0, 16], sizes = [8, 256], strides = [1, 1]} : vector<8x496xf32> to vector<8x256xf32>
    %9 = vector.broadcast %7 : vector<8x1xf32> to vector<8x256xf32>
    %10 = arith.mulf %9, %8 : vector<8x256xf32>
    %11 = arith.addf %6, %10 : vector<8x256xf32>
    %12 = vector.extract_strided_slice %2 {offsets = [0, 2], sizes = [8, 1], strides = [1, 1]} : vector<8x16xf32> to vector<8x1xf32>
    %13 = vector.extract_strided_slice %1 {offsets = [0, 32], sizes = [8, 256], strides = [1, 1]} : vector<8x496xf32> to vector<8x256xf32>
    %14 = vector.broadcast %12 : vector<8x1xf32> to vector<8x256xf32>
    %15 = arith.mulf %14, %13 : vector<8x256xf32>
    %16 = arith.addf %11, %15 : vector<8x256xf32>
    %17 = vector.extract_strided_slice %2 {offsets = [0, 3], sizes = [8, 1], strides = [1, 1]} : vector<8x16xf32> to vector<8x1xf32>
    %18 = vector.extract_strided_slice %1 {offsets = [0, 48], sizes = [8, 256], strides = [1, 1]} : vector<8x496xf32> to vector<8x256xf32>
    %19 = vector.broadcast %17 : vector<8x1xf32> to vector<8x256xf32>
    %20 = arith.mulf %19, %18 : vector<8x256xf32>
    %21 = arith.addf %16, %20 : vector<8x256xf32>
    %22 = vector.extract_strided_slice %2 {offsets = [0, 4], sizes = [8, 1], strides = [1, 1]} : vector<8x16xf32> to vector<8x1xf32>
    %23 = vector.extract_strided_slice %1 {offsets = [0, 64], sizes = [8, 256], strides = [1, 1]} : vector<8x496xf32> to vector<8x256xf32>
    %24 = vector.broadcast %22 : vector<8x1xf32> to vector<8x256xf32>
    %25 = arith.mulf %24, %23 : vector<8x256xf32>
    %26 = arith.addf %21, %25 : vector<8x256xf32>
    %27 = vector.extract_strided_slice %2 {offsets = [0, 5], sizes = [8, 1], strides = [1, 1]} : vector<8x16xf32> to vector<8x1xf32>
    %28 = vector.extract_strided_slice %1 {offsets = [0, 80], sizes = [8, 256], strides = [1, 1]} : vector<8x496xf32> to vector<8x256xf32>
    %29 = vector.broadcast %27 : vector<8x1xf32> to vector<8x256xf32>
    %30 = arith.mulf %29, %28 : vector<8x256xf32>
    %31 = arith.addf %26, %30 : vector<8x256xf32>
    %32 = vector.extract_strided_slice %2 {offsets = [0, 6], sizes = [8, 1], strides = [1, 1]} : vector<8x16xf32> to vector<8x1xf32>
    %33 = vector.extract_strided_slice %1 {offsets = [0, 96], sizes = [8, 256], strides = [1, 1]} : vector<8x496xf32> to vector<8x256xf32>
    %34 = vector.broadcast %32 : vector<8x1xf32> to vector<8x256xf32>
    %35 = arith.mulf %34, %33 : vector<8x256xf32>
    %36 = arith.addf %31, %35 : vector<8x256xf32>
    %37 = vector.extract_strided_slice %2 {offsets = [0, 7], sizes = [8, 1], strides = [1, 1]} : vector<8x16xf32> to vector<8x1xf32>
    %38 = vector.extract_strided_slice %1 {offsets = [0, 112], sizes = [8, 256], strides = [1, 1]} : vector<8x496xf32> to vector<8x256xf32>
    %39 = vector.broadcast %37 : vector<8x1xf32> to vector<8x256xf32>
    %40 = arith.mulf %39, %38 : vector<8x256xf32>
    %41 = arith.addf %36, %40 : vector<8x256xf32>
    %42 = vector.extract_strided_slice %2 {offsets = [0, 8], sizes = [8, 1], strides = [1, 1]} : vector<8x16xf32> to vector<8x1xf32>
    %43 = vector.extract_strided_slice %1 {offsets = [0, 128], sizes = [8, 256], strides = [1, 1]} : vector<8x496xf32> to vector<8x256xf32>
    %44 = vector.broadcast %42 : vector<8x1xf32> to vector<8x256xf32>
    %45 = arith.mulf %44, %43 : vector<8x256xf32>
    %46 = arith.addf %41, %45 : vector<8x256xf32>
    %47 = vector.extract_strided_slice %2 {offsets = [0, 9], sizes = [8, 1], strides = [1, 1]} : vector<8x16xf32> to vector<8x1xf32>
    %48 = vector.extract_strided_slice %1 {offsets = [0, 144], sizes = [8, 256], strides = [1, 1]} : vector<8x496xf32> to vector<8x256xf32>
    %49 = vector.broadcast %47 : vector<8x1xf32> to vector<8x256xf32>
    %50 = arith.mulf %49, %48 : vector<8x256xf32>
    %51 = arith.addf %46, %50 : vector<8x256xf32>
    %52 = vector.extract_strided_slice %2 {offsets = [0, 10], sizes = [8, 1], strides = [1, 1]} : vector<8x16xf32> to vector<8x1xf32>
    %53 = vector.extract_strided_slice %1 {offsets = [0, 160], sizes = [8, 256], strides = [1, 1]} : vector<8x496xf32> to vector<8x256xf32>
    %54 = vector.broadcast %52 : vector<8x1xf32> to vector<8x256xf32>
    %55 = arith.mulf %54, %53 : vector<8x256xf32>
    %56 = arith.addf %51, %55 : vector<8x256xf32>
    %57 = vector.extract_strided_slice %2 {offsets = [0, 11], sizes = [8, 1], strides = [1, 1]} : vector<8x16xf32> to vector<8x1xf32>
    %58 = vector.extract_strided_slice %1 {offsets = [0, 176], sizes = [8, 256], strides = [1, 1]} : vector<8x496xf32> to vector<8x256xf32>
    %59 = vector.broadcast %57 : vector<8x1xf32> to vector<8x256xf32>
    %60 = arith.mulf %59, %58 : vector<8x256xf32>
    %61 = arith.addf %56, %60 : vector<8x256xf32>
    %62 = vector.extract_strided_slice %2 {offsets = [0, 12], sizes = [8, 1], strides = [1, 1]} : vector<8x16xf32> to vector<8x1xf32>
    %63 = vector.extract_strided_slice %1 {offsets = [0, 192], sizes = [8, 256], strides = [1, 1]} : vector<8x496xf32> to vector<8x256xf32>
    %64 = vector.broadcast %62 : vector<8x1xf32> to vector<8x256xf32>
    %65 = arith.mulf %64, %63 : vector<8x256xf32>
    %66 = arith.addf %61, %65 : vector<8x256xf32>
    %67 = vector.extract_strided_slice %2 {offsets = [0, 13], sizes = [8, 1], strides = [1, 1]} : vector<8x16xf32> to vector<8x1xf32>
    %68 = vector.extract_strided_slice %1 {offsets = [0, 208], sizes = [8, 256], strides = [1, 1]} : vector<8x496xf32> to vector<8x256xf32>
    %69 = vector.broadcast %67 : vector<8x1xf32> to vector<8x256xf32>
    %70 = arith.mulf %69, %68 : vector<8x256xf32>
    %71 = arith.addf %66, %70 : vector<8x256xf32>
    %72 = vector.extract_strided_slice %2 {offsets = [0, 14], sizes = [8, 1], strides = [1, 1]} : vector<8x16xf32> to vector<8x1xf32>
    %73 = vector.extract_strided_slice %1 {offsets = [0, 224], sizes = [8, 256], strides = [1, 1]} : vector<8x496xf32> to vector<8x256xf32>
    %74 = vector.broadcast %72 : vector<8x1xf32> to vector<8x256xf32>
    %75 = arith.mulf %74, %73 : vector<8x256xf32>
    %76 = arith.addf %71, %75 : vector<8x256xf32>
    %77 = vector.extract_strided_slice %2 {offsets = [0, 15], sizes = [8, 1], strides = [1, 1]} : vector<8x16xf32> to vector<8x1xf32>
    %78 = vector.extract_strided_slice %1 {offsets = [0, 240], sizes = [8, 256], strides = [1, 1]} : vector<8x496xf32> to vector<8x256xf32>
    %79 = vector.broadcast %77 : vector<8x1xf32> to vector<8x256xf32>
    %80 = arith.mulf %79, %78 : vector<8x256xf32>
    %81 = arith.addf %76, %80 : vector<8x256xf32>
    %c0_4 = arith.constant 0 : index
    %c0_5 = arith.constant 0 : index
    %82 = vector.load %arg5[%c0_4, %c0_5] : memref<8x2xf32, #tpu.memory_space<vmem>>, vector<8x1xf32>
    %83 = vector.broadcast %82 : vector<8x1xf32> to vector<8x256xf32>
    %84 = arith.addf %81, %83 : vector<8x256xf32>
    %cst = arith.constant 0.000000e+00 : f32
    %85 = vector.broadcast %cst : f32 to vector<8x256xf32>
    %86 = arith.cmpf ogt, %84, %85 : vector<8x256xf32>
    %cst_6 = arith.constant 0.000000e+00 : f32
    %87 = vector.broadcast %cst_6 : f32 to vector<8x256xf32>
    %88 = arith.minimumf %84, %87 : vector<8x256xf32>
    %89 = math.exp %88 : vector<8x256xf32>
    %cst_7 = arith.constant 1.000000e+00 : f32
    %90 = vector.broadcast %cst_7 : f32 to vector<8x256xf32>
    %91 = arith.subf %89, %90 : vector<8x256xf32>
    %92 = arith.select %86, %84, %91 : vector<8x256xi1>, vector<8x256xf32>
    %c0_8 = arith.constant 0 : index
    %c0_9 = arith.constant 0 : index
    %c0_10 = arith.constant 0 : index
    %93 = vector.load %arg2[%c0_8, %c0_9, %c0_10] : memref<1x4x256xf32, #tpu.memory_space<vmem>>, vector<1x4x256xf32>
    %94 = vector.shape_cast %93 : vector<1x4x256xf32> to vector<4x256xf32>
    %c0_11 = arith.constant 0 : index
    %c0_12 = arith.constant 0 : index
    %95 = vector.load %arg4[%c0_11, %c0_12] : memref<8x4xf32, #tpu.memory_space<vmem>>, vector<8x4xf32>
    %96 = vector.extract_strided_slice %95 {offsets = [0, 0], sizes = [8, 1], strides = [1, 1]} : vector<8x4xf32> to vector<8x1xf32>
    %97 = vector.extract_strided_slice %94 {offsets = [0, 0], sizes = [1, 256], strides = [1, 1]} : vector<4x256xf32> to vector<1x256xf32>
    %98 = vector.broadcast %96 : vector<8x1xf32> to vector<8x256xf32>
    %99 = vector.broadcast %97 : vector<1x256xf32> to vector<8x256xf32>
    %100 = arith.mulf %98, %99 : vector<8x256xf32>
    %101 = vector.extract_strided_slice %95 {offsets = [0, 1], sizes = [8, 1], strides = [1, 1]} : vector<8x4xf32> to vector<8x1xf32>
    %102 = vector.extract_strided_slice %94 {offsets = [1, 0], sizes = [1, 256], strides = [1, 1]} : vector<4x256xf32> to vector<1x256xf32>
    %103 = vector.broadcast %101 : vector<8x1xf32> to vector<8x256xf32>
    %104 = vector.broadcast %102 : vector<1x256xf32> to vector<8x256xf32>
    %105 = arith.mulf %103, %104 : vector<8x256xf32>
    %106 = arith.addf %100, %105 : vector<8x256xf32>
    %107 = vector.extract_strided_slice %95 {offsets = [0, 2], sizes = [8, 1], strides = [1, 1]} : vector<8x4xf32> to vector<8x1xf32>
    %108 = vector.extract_strided_slice %94 {offsets = [2, 0], sizes = [1, 256], strides = [1, 1]} : vector<4x256xf32> to vector<1x256xf32>
    %109 = vector.broadcast %107 : vector<8x1xf32> to vector<8x256xf32>
    %110 = vector.broadcast %108 : vector<1x256xf32> to vector<8x256xf32>
    %111 = arith.mulf %109, %110 : vector<8x256xf32>
    %112 = arith.addf %106, %111 : vector<8x256xf32>
    %113 = vector.extract_strided_slice %95 {offsets = [0, 3], sizes = [8, 1], strides = [1, 1]} : vector<8x4xf32> to vector<8x1xf32>
    %114 = vector.extract_strided_slice %94 {offsets = [3, 0], sizes = [1, 256], strides = [1, 1]} : vector<4x256xf32> to vector<1x256xf32>
    %115 = vector.broadcast %113 : vector<8x1xf32> to vector<8x256xf32>
    %116 = vector.broadcast %114 : vector<1x256xf32> to vector<8x256xf32>
    %117 = arith.mulf %115, %116 : vector<8x256xf32>
    %118 = arith.addf %112, %117 : vector<8x256xf32>
    %c0_13 = arith.constant 0 : index
    %c1 = arith.constant 1 : index
    %119 = vector.load %arg5[%c0_13, %c1] : memref<8x2xf32, #tpu.memory_space<vmem>>, vector<8x1xf32>
    %120 = vector.broadcast %119 : vector<8x1xf32> to vector<8x256xf32>
    %121 = arith.addf %118, %120 : vector<8x256xf32>
    %cst_14 = arith.constant 0.000000e+00 : f32
    %122 = vector.broadcast %cst_14 : f32 to vector<8x256xf32>
    %123 = arith.cmpf ogt, %121, %122 : vector<8x256xf32>
    %cst_15 = arith.constant 0.000000e+00 : f32
    %124 = vector.broadcast %cst_15 : f32 to vector<8x256xf32>
    %125 = arith.minimumf %121, %124 : vector<8x256xf32>
    %126 = math.exp %125 : vector<8x256xf32>
    %cst_16 = arith.constant 1.000000e+00 : f32
    %127 = vector.broadcast %cst_16 : f32 to vector<8x256xf32>
    %128 = arith.subf %126, %127 : vector<8x256xf32>
    %129 = arith.select %123, %121, %128 : vector<8x256xi1>, vector<8x256xf32>
    %130 = arith.addf %92, %129 : vector<8x256xf32>
    %c0_17 = arith.constant 0 : index
    %c0_18 = arith.constant 0 : index
    %c0_19 = arith.constant 0 : index
    %131 = vector.load %arg6[%c0_17, %c0_18, %c0_19] : memref<1x8x256xf32, #tpu.memory_space<vmem>>, vector<1x8x256xf32>
    %132 = vector.shape_cast %131 : vector<1x8x256xf32> to vector<8x256xf32>
    %133 = vector.shape_cast %130 : vector<8x256xf32> to vector<1x8x256xf32>
    tpu.vector_store %arg6[%c0_17, %c0_18, %c0_19], %133 {strides = array<i32>} : memref<1x8x256xf32, #tpu.memory_space<vmem>>, vector<1x8x256xf32>,
    return
  }
  func.func @transform_0(%arg0: i32) -> (i32, i32, i32) {
    %c0_i32 = arith.constant 0 : i32
    %c0_i32_0 = arith.constant 0 : i32
    %c0_i32_1 = arith.constant 0 : i32
    return %arg0, %c0_i32, %c0_i32_0 : i32, i32, i32
  }
  func.func @transform_1(%arg0: i32) -> (i32, i32, i32) {
    %c0_i32 = arith.constant 0 : i32
    %c0_i32_0 = arith.constant 0 : i32
    %c0_i32_1 = arith.constant 0 : i32
    return %arg0, %c0_i32, %c0_i32_0 : i32, i32, i32
  }
  func.func @transform_2(%arg0: i32) -> (i32, i32) {
    %c0_i32 = arith.constant 0 : i32
    %c0_i32_0 = arith.constant 0 : i32
    %c0_i32_1 = arith.constant 0 : i32
    return %c0_i32, %c0_i32_0 : i32, i32
  }
  func.func @transform_3(%arg0: i32) -> (i32, i32) {
    %c0_i32 = arith.constant 0 : i32
    %c0_i32_0 = arith.constant 0 : i32
    %c0_i32_1 = arith.constant 0 : i32
    return %c0_i32, %c0_i32_0 : i32, i32
  }
  func.func @transform_4(%arg0: i32) -> (i32, i32) {
    %c0_i32 = arith.constant 0 : i32
    %c0_i32_0 = arith.constant 0 : i32
    %c0_i32_1 = arith.constant 0 : i32
    return %c0_i32, %c0_i32_0 : i32, i32
  }
  func.func @transform_5(%arg0: i32) -> (i32, i32, i32) {
    %c0_i32 = arith.constant 0 : i32
    %c0_i32_0 = arith.constant 0 : i32
    %c0_i32_1 = arith.constant 0 : i32
    return %arg0, %c0_i32, %c0_i32_0 : i32, i32, i32
  }
}

</mosaic_0001>

<bundles_post_ra>
// kernel: tpu_custom_call.1
= control target key start
LH: loop header
LB: loop body
LE: loop exit
PB: predicated region body
PF: predicated region fallthrough
CT: control target
= control target key end

     0   :  { %10 = vsyncpa [#allocation3], 0  ;;  %s1488_s0 = inlined_call_operand.hbm [shape: f32[2,8,496], index: 0, kind: input, shape index: {}]   ;;  %s1489_s1 = inlined_call_operand.vmem [shape: f32[2,4,256], index: 1, kind: input, shape index: {}]   ;;  %s1490_s2 = inlined_call_operand.vmem [shape: f32[8,16], index: 2, kind: input, shape index: {}]   ;;  %s1491_s3 = inlined_call_operand.vmem [shape: f32[8,4], index: 3, kind: input, shape index: {}]   ;;  %s1492_s4 = inlined_call_operand.vmem [shape: f32[8,2], index: 4, kind: input, shape index: {}]   ;;  %s1493_s5 = inlined_call_operand.hbm [shape: f32[2,8,256], index: 5, kind: output, shape index: {}]  }
   0x1   :  { %12 = vsyncpa [#allocation3 + $0x1], 0 }
   0x2   :  { %13 = vsyncpa [#allocation4], 0 }
   0x3   :  { %15 = vsyncpa [#allocation4 + $0x1], 0  ;;  %s1114_s18 = smov 0   ;;  %s1116_s19 = smov 0  }
   0x4   :  { %s1118_s20 = smov 0   ;;  %s1120_s21 = smov 0  }
   0x5 LB: > { %s1135_s22 = sadd.s32 4294967295, %s1057_s21   ;;  %s841_s23 = sadd.s32 4294967294, %s1057_s21   ;;  %s1057_s21 = sphi %s1120_s21, %s1508_s21   ;;  %s1053_s20 = sphi %s1118_s20, %s1507_s20   ;;  %s1049_s19 = sphi %s1116_s19, %s1506_s19   ;;  %s1045_s18 = sphi %s1114_s18, %s1505_s18  }
   0x6   : > { %s1139_s24 = sadd.s32 1, %s1057_s21   ;;  %s28_s25 = sadd.s32 1, %s1053_s20 }
   0x7   : > { %s25_s26 = ssub.s32 %s1057_s21, %s1139_s24  ;;  %p35_p0 = scmp.ne.s32.totalorder %s1053_s20, %s1049_s19 }
   0x8   : > { %p26_p1 = scmp.eq.s32.totalorder %s25_s26, 0  ;;  %p36_p2 = scmp.eq.s32.totalorder %s1057_s21, 0 }
   0x9   : > { %p41_p3 = scmp.ne.s32.totalorder %s1049_s19, %s1045_s18  ;;  %p42_p4 = scmp.eq.s32.totalorder %s1135_s22, 0 }
   0xa   : > { %s1151_s27 = scalar_select %p26_p1, %s1053_s20, %s28_s25  }
   0xb   : > { %p1153_p5 = por %p36_p2, %p35_p0  ;;  %p1157_p6 = por %p42_p4, %p41_p3 }
   0xc   : > { %p154_p7 = scmp.eq.s32.totalorder %s1135_s22, 1  ;;  %p160_p8 = scmp.eq.s32.totalorder %s841_s23, 1 }
   0xd   : > { %p876_p10 = scmp.lt.s32.totalorder %s1057_s21, 2  ;;  %s189_s7 = sand.u32 1, %s1053_s20  }
   0xe   : > { %p1164_p11 = por %p154_p7, %p35_p0  ;;  %p1168_p12 = por %p160_p8, %p41_p3 }
   0xf   : > { %s861_s8 = sshll.u32 %s1057_s21, 9  ;;  %s844_s9 = sshll.u32 %s189_s7, 5 }
  0x10   : > { %s1497_s30 = scalar_select %p1164_p11, 1, 0 }
  0x11   : > { %s1498_s6 = scalar_select %p1168_p12, 1, 0 }
  0x12   : > { %s1177_s12 = scalar_lea.hbm %s1488_s0, %s861_s8  ;;  %s193_s13 = scalar_lea.vmem [#allocation2], %s844_s9 }
  0x13   : > { %s201_s14 = sshll.u32 %s193_s13, 4  ;;  %p1181_p13 = pnand %p876_p10, %p1153_p5  ;;  %s1185_s14 = int_to_ptr.vmem [resolvable:$true] %s201_s14 }
  0x14   : > { %s190_s16 = scalar_lea.sflag [#allocation3], %s189_s7  ;;  %s961_s17 = scalar_lea.hbm %s1177_s12, 512 }
  0x15   : > { %p962_p2 = scmp.ne.s32.totalorder %s1177_s12, %s961_s17  ;;  %p963_p3 = pneg %p1181_p13 }
  0x16   : > { %s966_s26 = scalar_lea.hbm %s1488_s0, 1024  ;;  %p967_p5 = scmp.lt.u32.totalorder %s1177_s12, %s1488_s0 }
  0x17   : > { %p964_p4 = pnand %p963_p3, %p962_p2  ;;  %p968_p8 = scmp.lt.u32.totalorder %s966_s26, %s961_s17 }
  0x18   : > { %p970_p9 = scmp.lt.u32.totalorder %s961_s17, %s1177_s12 }
  0x19   : > { %p965_p7 = pneg %p964_p4  ;;  %p969_p10 = por %p968_p8, %p967_p5 }
  0x1b   : > { %p971_p0 = por %p970_p9, %p969_p10 }
  0x1d   : > { %p972_p1 = pnand %p971_p0, %p965_p7 }
  0x1f   : > { %975 = shalt.err (!%p972_p1)
}
  0x20   : > { %s976_s7 = scalar_lea.vmem %s1185_s14, 512  ;;  %s1059_s9 = smov [#allocation2]  }
  0x21   : > { %p977_p2 = scmp.ne.s32.totalorder %s1185_s14, %s976_s7  ;;  %s981_s10 = sshll.u32 %s1059_s9, 4  ;;  %s982_s10 = int_to_ptr.vmem [resolvable:$false] %s981_s10 }
  0x22   : > { %s983_s11 = scalar_lea.vmem %s982_s10, 1024  ;;  %p984_p11 = scmp.lt.s32.totalorder %s1185_s14, %s982_s10 }
  0x23   : > { %p979_p4 = pnand %p977_p2, %p963_p3  ;;  %p985_p5 = scmp.lt.s32.totalorder %s983_s11, %s976_s7 }
  0x25   : > { %p980_p12 = pneg %p979_p4  ;;  %p986_p8 = por %p985_p5, %p984_p11 }
  0x27   : > { %p987_p9 = pnand %p986_p8, %p980_p12 }
  0x29   : > { %990 = shalt.err (!%p987_p9)
}
  0x2a   : > { %871 = dma.hbm_to_vmem [thread:$0]  (!%p1181_p13), %s1177_s12, 512, %s1185_s14, %s190_s16  }
  0x2b   : > { %p1500_p0 = scmp.lt.s32.totalorder %s1057_s21, 3  ;;  %p1501_p1 = scmp.ge.s32.totalorder %s1057_s21, 1 }
  0x2d   : > { %p215_p3 = pnand %p1501_p1, %p1500_p0 }
  0x2e   : > { %s1219_s13 = sand.u32 (!%p215_p3), 1, %s1049_s19  }
  0x2f   : > { %218 = sbr.rel (%p215_p3) target bundleno = 451 (0x1c3), region = 40  ;;  %s848_s17 = sshll.u32 (!%p215_p3), %s1219_s13, 5 }
  0x30   : > { %s221_s23 = scalar_lea.sflag (!%p215_p3), [#allocation3], %s1219_s13  ;;  %s1223_s25 = scalar_lea.vmem (!%p215_p3), [#allocation2], %s848_s17 }
  0x36   : > { %1036 = dma.done.wait (%p1157_p6), %s221_s23, 512  }
  0x37   : > { %1038 = vsyncadd (%p1157_p6), %s221_s23, 4294966784  ;;  %v1060_v0 = vmov 3   ;;  %v1061_v1 = vmov 1   ;;  %v265_v2 = vld [vmem:[%s1490_s2] sm:$0xff]  ;;  %v1062_v3 = vmov 4   ;;  %v1063_v4 = vmov 6  }
  0x38   : > { %934 = vset.pattern.permute.xlu1 %v1060_v0  ;;  %933 = vset.pattern.permute.xlu0 %v1061_v1  ;;  %v1064_v5 = vmov 5   ;;  %v1065_v6 = vmov 10   ;;  %v1066_v7 = vmov 7   ;;  %v1067_v8 = vmov 13   ;;  %v617_v13 = vld [vmem:[%s1491_s3] sm:$0xff]  ;;  %v1242_v20 = vld [vmem:[%s1223_s25 + $0x10] sm:$0xff] }
  0x39   : > { %320 = vperm.xlu1 %934, %v265_v2   ;;  %274 = vperm.xlu0 %933, %v265_v2   ;;  %v1068_v9 = vmov 9   ;;  %v1069_v10 = vmov 8   ;;  %v1070_v11 = vmov 11   ;;  %v1071_v12 = vmov 2   ;;  %v596_v18 = vld [vmem:[%s1492_s4] sm:$0xff]  ;;  %v1247_v25 = vld [vmem:[%s1223_s25 + $0x8] sm:$0xff] }
  0x3a   : > { %v1072_v14 = vmov 12   ;;  %v1073_v15 = vmov 0   ;;  %v1074_v16 = vmov 14   ;;  %v1075_v17 = vmov 15   ;;  %v1239_v19 = vld [vmem:[%s1223_s25] sm:$0xff]  ;;  %s1076_s28 = smov 112  }
  0x3b   : > { %p256_p6 = scmp.lt.s32.totalorder %s1135_s22, 1  ;;  %v624_v40 = vlaneseq  ;;  %s1077_s7 = smov 96   ;;  %vm289_vm0 = vcmask 916480   ;;  %vm312_vm1 = vcmask 785408   ;;  %vm335_vm2 = vcmask 654336  }
  0x3c   : > { %s1078_s23 = smov 80   ;;  %s1079_s12 = smov 64   ;;  %vm358_vm3 = vcmask 523264   ;;  %vm381_vm4 = vcmask 392192   ;;  %vm404_vm5 = vcmask 261120   ;;  %vm427_vm6 = vcmask 130048  }
  0x3d   : > { %935 = vset.pattern.permute.xlu1 %v1062_v3  ;;  %937 = vset.pattern.permute.xlu0 %v1063_v4  ;;  %s257_s8 = scalar_select %p256_p6, %s1135_s22, 1  ;;  %v625_v44 = vshrl.u32 %v624_v40, 7 }
  0x3e   : > { %343 = vperm.xlu1 %935, %v265_v2   ;;  %389 = vperm.xlu0 %937, %v265_v2   ;;  %s1080_s14 = smov 48   ;;  %s1081_s29 = smov 32  }
  0x3f   : > { %s862_s9 = sshll.u32 %s257_s8, 3  ;;  %v626_v48 = vsub.s32 0, %v625_v44  ;;  %v630_v51 = vsub.s32 4, %v625_v44  ;;  %v650_v53 = vsub.s32 1, %v625_v44  ;;  %v654_v54 = vsub.s32 5, %v625_v44  ;;  %s1082_s15 = smov 16  }
  0x40   : > { %s260_s17 = scalar_lea.vmem %s1489_s1, %s862_s9  ;;  %v676_v55 = vsub.s32 2, %v625_v44  ;;  %v680_v56 = vsub.s32 6, %v625_v44  ;;  %v702_v3 = vsub.s32 3, %v625_v44  ;;  %v706_v4 = vsub.s32 7, %v625_v44  ;;  %s863_s16 = sshll.u32 %s1135_s22, 8 }
  0x41   : > { %v616_v52 = vld [vmem:[%s260_s17] sm:$0xff]  ;;  %s1444_s9 = scalar_lea.hbm %s1493_s5, %s863_s16  ;;  %s745_s22 = scalar_lea.sflag [#allocation4], %s1219_s13 }
  0x42   : > { %936 = vset.pattern.permute.xlu1 %v1064_v5  ;;  %940 = vset.pattern.permute.xlu0 %v1065_v6  ;;  %v627_v59 = vrot.slane %v616_v52, %v626_v48  ;;  %v631_v62 = vrot.slane %v616_v52, %v630_v51  ;;  %v651_v63 = vrot.slane %v616_v52, %v650_v53  ;;  %p1502_p12 = scmp.ne.s32.totalorder %s1497_s30, 0  ;;  %s1083_s11 = smov [#allocation5]  }
  0x43   : > { %366 = vperm.xlu1 %936, %v265_v2   ;;  %465 = vperm.xlu0 %940, %v265_v2   ;;  %s995_s17 = sshll.u32 %s1083_s11, 4  ;;  %s996_s17 = int_to_ptr.vmem [resolvable:$false] %s995_s17 }
  0x47   : > { %938 = vset.pattern.permute.xlu1 %v1066_v7  ;;  %943 = vset.pattern.permute.xlu0 %v1067_v8  ;;  %v637_v7 = vrot.slane %v627_v59, %v626_v48  ;;  %v641_v8 = vrot.slane %v631_v62, %v626_v48 }
  0x48   : > { %412 = vperm.xlu1 %938, %v265_v2   ;;  %531 = vperm.xlu0 %943, %v265_v2  }
  0x4c   : > { %939 = vset.pattern.permute.xlu1 %v1068_v9  ;;  %946 = vset.pattern.permute.xlu0 %v1069_v10 }
  0x4d   : > { %443 = vperm.xlu1 %939, %v265_v2   ;;  %435 = vperm.xlu0 %946, %v265_v2  }
  0x51   : > { %941 = vset.pattern.permute.xlu1 %v1070_v11  ;;  %947 = vset.pattern.permute.xlu0 %v1071_v12  ;;  %v661_v11 = vrot.slane %v651_v63, %v650_v53  ;;  %v264_v63 = vld [vmem:[%s1223_s25 + $0x18] sm:$0xff]  ;;  %s849_s25 = sshll.u32 %s1219_s13, 4 }
  0x52   : > { %487 = vperm.xlu1 %941, %v265_v2   ;;  %297 = vperm.xlu0 %947, %v265_v2   ;;  %s255_s26 = scalar_lea.vmem [#allocation5], %s849_s25 }
  0x56   : > { %942 = vset.pattern.permute.xlu1 %v1072_v14  ;;  %671 = vperm.xlu0 %947, %v617_v13  }
  0x57   : > { %509 = vperm.xlu1 %942, %v265_v2  }
  0x5a   : > { %949 = vset.pattern.permute.xlu0 %v1073_v15  ;;  %v703_v15 = vrot.slane %v616_v52, %v702_v3 }
  0x5b   : > { %944 = vset.pattern.permute.xlu1 %v1074_v16  ;;  %268 = vperm.xlu0 %949, %v265_v2   ;;  %v707_v16 = vrot.slane %v616_v52, %v706_v4 }
  0x5c   : > { %553 = vperm.xlu1 %944, %v265_v2  }
  0x5d   : > { %v717_v40 = vrot.slane %v707_v16, %v702_v3 }
  0x5f   : > { %620 = vperm.xlu0 %949, %v617_v13  }
  0x60   : > { %945 = vset.pattern.permute.xlu1 %v1075_v17 }
  0x61   : > { %575 = vperm.xlu1 %945, %v265_v2   ;;  %v681_v2 = vrot.slane %v616_v52, %v680_v56 }
  0x63   : > { %599 = vperm.xlu0 %949, %v596_v18   ;;  %v691_v14 = vrot.slane %v681_v2, %v676_v55 }
  0x65   : > { %948 = vset.pattern.permute.xlu1 %v1061_v1 }
  0x66   : > { %645 = vperm.xlu1 %948, %v617_v13  }
  0x67   : > { %952 = vset.pattern.permute.xlu0 %v1061_v1 }
  0x6a   : > { %950 = vset.pattern.permute.xlu1 %v1060_v0  ;;  %v655_v0 = vrot.slane %v616_v52, %v654_v54 }
  0x6b   : > { %697 = vperm.xlu1 %950, %v617_v13  }
  0x6c   : > { %v665_v12 = vrot.slane %v655_v0, %v650_v53 }
  0x6f   : > { %951 = vset.pattern.permute.xlu1 %v1061_v1  ;;  %v677_v1 = vrot.slane %v616_v52, %v676_v55 }
  0x70   : > { %723 = vperm.xlu1 %951, %v596_v18  }
  0x71   : > { %v687_v13 = vrot.slane %v677_v1, %v676_v55 }
  0xb8   : > { %v275_v21 = vpop.permute.xlu0 %274  ;;  %v321_v22 = vpop.permute.xlu1 %320 }
  0xb9   : > { %v277_v23 = vmul.f32 %v275_v21, %v1239_v19  ;;  %v279_v24 = vmul.f32 %v275_v21, %v1242_v20  ;;  %v278_v26 = vmul.f32 %v275_v21, %v1247_v25  ;;  %v323_v43 = vmul.f32 %v321_v22, %v1239_v19 }
  0xba   : > { %v324_v49 = vmul.f32 %v321_v22, %v1247_v25  ;;  %v325_v50 = vmul.f32 %v321_v22, %v1242_v20 }
  0xbb   : > { %287 = vrot.lane.b32.xlu0 %v279_v24, %s1076_s28  ;;  %283 = vrot.lane.b32.xlu1 %v277_v23, %s1076_s28 }
  0xbd   : > { %v1252_v27 = vpop.permute.xlu0 %389  ;;  %v344_v28 = vpop.permute.xlu1 %343 }
  0xbe   : > { %v346_v60 = vmul.f32 %v344_v28, %v1239_v19  ;;  %v347_v61 = vmul.f32 %v344_v28, %v1247_v25  ;;  %v348_v10 = vmul.f32 %v344_v28, %v1242_v20  ;;  %v393_v23 = vmul.f32 %v1252_v27, %v1247_v25 }
  0xbf   : > { %285 = vrot.lane.b32.xlu1 %v278_v26, %s1076_s28  ;;  %v392_v54 = vmul.f32 %v1252_v27, %v1239_v19 }
  0xc2   : > { %v1255_v29 = vpop.permute.xlu0 %465  ;;  %v1257_v30 = vpop.permute.xlu1 %366 }
  0xc3   : > { %v371_v5 = vmul.f32 %v1257_v30, %v1242_v20  ;;  %v369_v17 = vmul.f32 %v1257_v30, %v1239_v19  ;;  %v370_v44 = vmul.f32 %v1257_v30, %v1247_v25  ;;  %v469_v62 = vmul.f32 %v1255_v29, %v1242_v20 }
  0xc4   : > { %v470_v4 = vmul.f32 %v1255_v29, %v264_v63 }
  0xc7   : > { %v1259_v31 = vpop.permute.xlu0 %531  ;;  %v1261_v32 = vpop.permute.xlu1 %412 }
  0xc8   : > { %v1265_v33 = vmul.f32 %v1259_v31, %v1247_v25  ;;  %v415_v28 = vmul.f32 %v1261_v32, %v1239_v19  ;;  %v417_v52 = vmul.f32 %v1261_v32, %v1242_v20 }
  0xcc   : > { %v436_v34 = vpop.permute.xlu0 %435  ;;  %v1267_v35 = vpop.permute.xlu1 %443 }
  0xcd   : > { %v1271_v36 = vmul.f32 %v436_v34, %v1247_v25  ;;  %v1274_v37 = vmul.f32 %v436_v34, %v1242_v20  ;;  %v447_v55 = vmul.f32 %v1267_v35, %v1242_v20  ;;  %v446_v0 = vmul.f32 %v1267_v35, %v1247_v25 }
  0xd1   : > { %v298_v38 = vpop.permute.xlu0 %297  ;;  %v1277_v39 = vpop.permute.xlu1 %487 }
  0xd2   : > { %v300_v41 = vmul.f32 %v298_v38, %v1239_v19  ;;  %v301_v42 = vmul.f32 %v298_v38, %v1247_v25  ;;  %v302_v45 = vmul.f32 %v298_v38, %v1242_v20  ;;  %v713_v38 = vrot.slane %v703_v15, %v702_v3 }
  0xd3   : > { %v492_v1 = vmul.f32 %v1277_v39, %v264_v63  ;;  %v468_v3 = vmul.f32 %v1255_v29, %v1247_v25  ;;  %v491_v29 = vmul.f32 %v1277_v39, %v1242_v20 }
  0xd4   : > { %308 = vrot.lane.b32.xlu0 %v301_v42, %s1077_s7  ;;  %306 = vrot.lane.b32.xlu1 %v300_v41, %s1077_s7 }
  0xd5   : > { %v672_v47 = vpop.permute.xlu0 %671 }
  0xd6   : > { %v1285_v46 = vpop.permute.xlu1 %509  ;;  %v692_v34 = vmul.f32 %v687_v13, %v672_v47  ;;  %v693_v41 = vmul.f32 %v691_v14, %v672_v47 }
  0xd7   : > { %v514_v2 = vmul.f32 %v1285_v46, %v264_v63 }
  0xd8   : > { %329 = vrot.lane.b32.xlu0 %v323_v43, %s1078_s23  ;;  %310 = vrot.lane.b32.xlu1 %v302_v45, %s1077_s7 }
  0xda   : > { %v1296_v58 = vpop.permute.xlu0 %268 }
  0xdb   : > { %v1294_v57 = vpop.permute.xlu1 %553 }
  0xdc   : > { %333 = vrot.lane.b32.xlu0 %v325_v50, %s1078_s23  ;;  %331 = vrot.lane.b32.xlu1 %v324_v49, %s1078_s23 }
  0xde   : > { %v621_v9 = vpop.permute.xlu0 %620 }
  0xdf   : > { %v642_v18 = vmul.f32 %v637_v7, %v621_v9  ;;  %v643_v21 = vmul.f32 %v641_v8, %v621_v9  ;;  %v557_v7 = vmul.f32 %v1294_v57, %v1242_v20  ;;  %v513_v9 = vmul.f32 %v1285_v46, %v1242_v20 }
  0xe0   : > { %354 = vrot.lane.b32.xlu0 %v347_v61, %s1079_s12  ;;  %352 = vrot.lane.b32.xlu1 %v346_v60, %s1079_s12  ;;  %v1306_v6 = vpop.permute.xlu1 %575  ;;  %v394_v60 = vmul.f32 %v1252_v27, %v1242_v20  ;;  %v416_v61 = vmul.f32 %v1261_v32, %v1247_v25  ;;  %v512_v27 = vmul.f32 %v1285_v46, %v1247_v25 }
  0xe1   : > { %v448_v32 = vmul.f32 %v1267_v35, %v264_v63  ;;  %v490_v35 = vmul.f32 %v1277_v39, %v1247_v25  ;;  %v578_v8 = vmul.f32 %v1306_v6, %v1247_v25  ;;  %v556_v39 = vmul.f32 %v1294_v57, %v1247_v25 }
  0xe2   : > { %v558_v46 = vmul.f32 %v1294_v57, %v264_v63  ;;  %v1398_v16 = vpop.permute.xlu0 %599 }
  0xe4   : > { %379 = vrot.lane.b32.xlu0 %v371_v5, %s1080_s14  ;;  %356 = vrot.lane.b32.xlu1 %v348_v10, %s1079_s12  ;;  %v535_v5 = vmul.f32 %v1259_v31, %v1242_v20  ;;  %v580_v10 = vmul.f32 %v1306_v6, %v264_v63 }
  0xe5   : > { %v646_v22 = vpop.permute.xlu1 %645 }
  0xe6   : > { %v666_v24 = vmul.f32 %v661_v11, %v646_v22  ;;  %v667_v26 = vmul.f32 %v665_v12, %v646_v22  ;;  %v536_v11 = vmul.f32 %v1259_v31, %v264_v63  ;;  %v579_v12 = vmul.f32 %v1306_v6, %v1242_v20 }
  0xe7   : > { %v271_v31 = vmul.f32 %v1296_v58, %v1239_v19 }
  0xe8   : > { %v668_v42 = vadd.f32 %v666_v24, %v642_v18  ;;  %v669_v43 = vadd.f32 %v667_v26, %v643_v21  ;;  %400 = vrot.lane.b32.xlu0 %v393_v23, %s1081_s29  ;;  %375 = vrot.lane.b32.xlu1 %v369_v17, %s1080_s14 }
  0xea   : > { %v698_v45 = vpop.permute.xlu1 %697  ;;  %v694_v48 = vadd.f32 %v692_v34, %v668_v42  ;;  %v695_v49 = vadd.f32 %v693_v41, %v669_v43 }
  0xeb   : > { %v718_v50 = vmul.f32 %v713_v38, %v698_v45  ;;  %v719_v51 = vmul.f32 %v717_v40, %v698_v45  ;;  %v272_v38 = vmul.f32 %v1296_v58, %v1247_v25 }
  0xec   : > { %421 = vrot.lane.b32.xlu0 %v415_v28, %s1082_s15  ;;  %377 = vrot.lane.b32.xlu1 %v370_v44, %s1080_s14 }
  0xed   : > { %v720_v47 = vadd.f32 %v718_v50, %v694_v48  ;;  %v721_v53 = vadd.f32 %v719_v51, %v695_v49 }
  0xef   : > { %v724_v30 = vpop.permute.xlu1 %723 }
  0xf0   : > { %v1329_v56 = vadd.f32 %v724_v30, %v720_v47  ;;  %v1331_v59 = vadd.f32 %v724_v30, %v721_v53  ;;  %425 = vrot.lane.b32.xlu0 %v417_v52, %s1082_s15  ;;  %398 = vrot.lane.b32.xlu1 %v392_v54, %s1081_s29 }
  0xf2   : > { %vm728_vm7 = vcmp.gt.f32.partialorder %v1329_v56, 0.0  ;;  %vm729_vm9 = vcmp.gt.f32.partialorder %v1331_v59, 0.0 }
  0xf4   : > { %454 = vrot.lane.b32.xlu0 %v447_v55, %s1076_s28  ;;  %402 = vrot.lane.b32.xlu1 %v394_v60, %s1081_s29 }
  0xf8   : > { %476 = vrot.lane.b32.xlu0 %v469_v62, %s1077_s7  ;;  %423 = vrot.lane.b32.xlu1 %v416_v61, %s1082_s15 }
  0xfc   : > { %500 = vrot.lane.b32.xlu0 %v492_v1, %s1078_s23  ;;  %452 = vrot.lane.b32.xlu1 %v446_v0, %s1076_s28 }
 0x100   : > { %518 = vrot.lane.b32.xlu0 %v512_v27, %s1079_s12  ;;  %456 = vrot.lane.b32.xlu1 %v448_v32, %s1076_s28  ;;  %s759_s28 = sshll.u32 %s255_s26, 4  ;;  %s1446_s28 = int_to_ptr.vmem [resolvable:$true] %s759_s28 }
 0x101   : > { %s991_s10 = scalar_lea.vmem %s1446_s28, 256  ;;  %p998_p10 = scmp.lt.s32.totalorder %s1446_s28, %s996_s17 }
 0x102   : > { %p992_p11 = scmp.ne.s32.totalorder %s1446_s28, %s991_s10 }
 0x104   : > { %522 = vrot.lane.b32.xlu0 %v514_v2, %s1079_s12  ;;  %474 = vrot.lane.b32.xlu1 %v468_v3, %s1077_s7  ;;  %p993_p13 = pnand %p992_p11, %p1502_p12 }
 0x106   : > { %p994_p7 = pneg %p993_p13 }
 0x108   : > { %542 = vrot.lane.b32.xlu0 %v535_v5, %s1080_s14  ;;  %478 = vrot.lane.b32.xlu1 %v470_v4, %s1077_s7 }
 0x10c   : > { %496 = vrot.lane.b32.xlu1 %v490_v35, %s1078_s23  ;;  %564 = vrot.lane.b32.xlu0 %v557_v7, %s1081_s29 }
 0x110   : > { %498 = vrot.lane.b32.xlu1 %v491_v29, %s1078_s23  ;;  %584 = vrot.lane.b32.xlu0 %v578_v8, %s1082_s15  ;;  %s997_s23 = scalar_lea.vmem %s996_s17, 512 }
 0x111   : > { %p999_p2 = scmp.lt.s32.totalorder %s997_s23, %s991_s10 }
 0x113   : > { %p1000_p4 = por %p999_p2, %p998_p10 }
 0x114   : > { %520 = vrot.lane.b32.xlu1 %v513_v9, %s1079_s12  ;;  %588 = vrot.lane.b32.xlu0 %v580_v10, %s1082_s15 }
 0x115   : > { %p1001_p5 = pnand %p1000_p4, %p994_p7 }
 0x118   : > { %540 = vrot.lane.b32.xlu1 %v1265_v33, %s1080_s14 }
 0x11c   : > { %544 = vrot.lane.b32.xlu1 %v536_v11, %s1080_s14 }
 0x120   : > { %562 = vrot.lane.b32.xlu1 %v556_v39, %s1081_s29 }
 0x124   : > { %566 = vrot.lane.b32.xlu1 %v558_v46, %s1081_s29 }
 0x128   : > { %586 = vrot.lane.b32.xlu1 %v579_v12, %s1082_s15 }
 0x12d   : > { %v284_v13 = vpop.permute.xlu1 %283  ;;  %v288_v17 = vpop.permute.xlu0 %287 }
 0x131   : > { %v286_v33 = vpop.permute.xlu1 %285 }
 0x132   : > { %v290_v14 = vsel %vm289_vm0, %v284_v13, %v286_v33  ;;  %v291_v40 = vsel %vm289_vm0, %v286_v33, %v288_v17 }
 0x133   : > { %v294_v15 = vadd.f32 %v290_v14, %v271_v31  ;;  %v295_v44 = vadd.f32 %v291_v40, %v272_v38 }
 0x146   : > { %v309_v57 = vpop.permute.xlu0 %308  ;;  %v307_v18 = vpop.permute.xlu1 %306 }
 0x147   : > { %v313_v42 = vsel %vm312_vm1, %v307_v18, %v309_v57 }
 0x148   : > { %v317_v50 = vadd.f32 %v313_v42, %v294_v15 }
 0x14a   : > { %v330_v21 = vpop.permute.xlu0 %329  ;;  %v311_v22 = vpop.permute.xlu1 %310 }
 0x14b   : > { %v314_v43 = vsel %vm312_vm1, %v309_v57, %v311_v22 }
 0x14c   : > { %v318_v51 = vadd.f32 %v314_v43, %v295_v44 }
 0x14e   : > { %v334_v23 = vpop.permute.xlu0 %333  ;;  %v332_v20 = vpop.permute.xlu1 %331 }
 0x14f   : > { %v336_v48 = vsel %vm335_vm2, %v330_v21, %v332_v20  ;;  %v337_v49 = vsel %vm335_vm2, %v332_v20, %v334_v23 }
 0x150   : > { %v340_v47 = vadd.f32 %v336_v48, %v317_v50  ;;  %v341_v53 = vadd.f32 %v337_v49, %v318_v51 }
 0x152   : > { %v355_v6 = vpop.permute.xlu0 %354  ;;  %v353_v24 = vpop.permute.xlu1 %352 }
 0x153   : > { %v359_v58 = vsel %vm358_vm3, %v353_v24, %v355_v6 }
 0x154   : > { %v363_v55 = vadd.f32 %v359_v58, %v340_v47 }
 0x156   : > { %v380_v26 = vpop.permute.xlu0 %379  ;;  %v357_v28 = vpop.permute.xlu1 %356 }
 0x157   : > { %v360_v52 = vsel %vm358_vm3, %v355_v6, %v357_v28 }
 0x158   : > { %v364_v60 = vadd.f32 %v360_v52, %v341_v53  ;;  %v730_v52 = vmin.f32 %v1329_v56, 0.0 }
 0x15a   : > { %v401_v34 = vpop.permute.xlu0 %400  ;;  %v376_v19 = vpop.permute.xlu1 %375 }
 0x15e   : > { %v378_v41 = vpop.permute.xlu1 %377  ;;  %v422_v45 = vpop.permute.xlu0 %421 }
 0x15f   : > { %v382_v54 = vsel %vm381_vm4, %v376_v19, %v378_v41  ;;  %v383_v30 = vsel %vm381_vm4, %v378_v41, %v380_v26 }
 0x160   : > { %v386_v1 = vadd.f32 %v382_v54, %v363_v55  ;;  %v387_v27 = vadd.f32 %v383_v30, %v364_v60  ;;  %v731_v54 = vmin.f32 %v1331_v59, 0.0 }
 0x162   : > { %v399_v25 = vpop.permute.xlu1 %398  ;;  %v426_v61 = vpop.permute.xlu0 %425 }
 0x163   : > { %v405_v63 = vsel %vm404_vm5, %v399_v25, %v401_v34 }
 0x164   : > { %v409_v32 = vadd.f32 %v405_v63, %v386_v1 }
 0x166   : > { %v403_v62 = vpop.permute.xlu1 %402  ;;  %v455_v35 = vpop.permute.xlu0 %454 }
 0x167   : > { %v406_v0 = vsel %vm404_vm5, %v401_v34, %v403_v62 }
 0x168   : > { %v410_v2 = vadd.f32 %v406_v0, %v387_v27  ;;  %v732_v0 = vmul.f32 1.442695, %v730_v52 }
 0x16a   : > { %v424_v3 = vpop.permute.xlu1 %423  ;;  %v477_v11 = vpop.permute.xlu0 %476  ;;  %953 = vpow2.f32 %v732_v0 }
 0x16b   : > { %v428_v4 = vsel %vm427_vm6, %v422_v45, %v424_v3  ;;  %v429_v5 = vsel %vm427_vm6, %v424_v3, %v426_v61 }
 0x16c   : > { %v432_v7 = vadd.f32 %v428_v4, %v409_v32  ;;  %v433_v8 = vadd.f32 %v429_v5, %v410_v2  ;;  %v734_v32 = vmul.f32 1.442695, %v731_v54 }
 0x16e   : > { %v453_v29 = vpop.permute.xlu1 %452  ;;  %v440_v9 = vadd.f32 %v1271_v36, %v432_v7  ;;  %v441_v10 = vadd.f32 %v1274_v37, %v433_v8  ;;  %v501_v12 = vpop.permute.xlu0 %500  ;;  %955 = vpow2.f32 %v734_v32 }
 0x16f   : > { %v458_v21 = vsel %vm289_vm0, %v453_v29, %v455_v35 }
 0x170   : > { %v462_v6 = vadd.f32 %v458_v21, %v440_v9 }
 0x172   : > { %v457_v39 = vpop.permute.xlu1 %456  ;;  %v519_v31 = vpop.permute.xlu0 %518 }
 0x173   : > { %v459_v22 = vsel %vm289_vm0, %v455_v35, %v457_v39 }
 0x174   : > { %v463_v24 = vadd.f32 %v459_v22, %v441_v10  ;;  %v954_v8 = vpop.eup %953 }
 0x175   : > { %v854_v9 = vadd.f32 -1.0, %v954_v8 }
 0x176   : > { %v475_v46 = vpop.permute.xlu1 %474  ;;  %v523_v15 = vpop.permute.xlu0 %522 }
 0x177   : > { %v480_v37 = vsel %vm312_vm1, %v475_v46, %v477_v11 }
 0x178   : > { %v484_v34 = vadd.f32 %v480_v37, %v462_v6  ;;  %v956_v29 = vpop.eup %955 }
 0x17a   : > { %v479_v13 = vpop.permute.xlu1 %478  ;;  %v543_v57 = vpop.permute.xlu0 %542 }
 0x17b   : > { %v481_v20 = vsel %vm312_vm1, %v477_v11, %v479_v13  ;;  %v855_v11 = vadd.f32 -1.0, %v956_v29 }
 0x17c   : > { %v485_v19 = vadd.f32 %v481_v20, %v463_v24 }
 0x17e   : > { %v497_v33 = vpop.permute.xlu1 %496  ;;  %v565_v23 = vpop.permute.xlu0 %564 }
 0x182   : > { %v499_v14 = vpop.permute.xlu1 %498  ;;  %v585_v44 = vpop.permute.xlu0 %584 }
 0x183   : > { %v502_v26 = vsel %vm335_vm2, %v497_v33, %v499_v14  ;;  %v503_v28 = vsel %vm335_vm2, %v499_v14, %v501_v12  ;;  %v738_v12 = vsel %vm728_vm7, %v1329_v56, %v854_v9 }
 0x184   : > { %v506_v42 = vadd.f32 %v502_v26, %v484_v34  ;;  %v507_v43 = vadd.f32 %v503_v28, %v485_v19 }
 0x186   : > { %v521_v17 = vpop.permute.xlu1 %520  ;;  %v589_v55 = vpop.permute.xlu0 %588 }
 0x187   : > { %v524_v40 = vsel %vm358_vm3, %v519_v31, %v521_v17  ;;  %v525_v41 = vsel %vm358_vm3, %v521_v17, %v523_v15  ;;  %v739_v31 = vsel %vm729_vm9, %v1331_v59, %v855_v11 }
 0x188   : > { %v528_v49 = vadd.f32 %v524_v40, %v506_v42  ;;  %v529_v50 = vadd.f32 %v525_v41, %v507_v43 }
 0x18a   : > { %v541_v18 = vpop.permute.xlu1 %540 }
 0x18b   : > { %v546_v45 = vsel %vm381_vm4, %v541_v18, %v543_v57 }
 0x18c   : > { %v550_v47 = vadd.f32 %v546_v45, %v528_v49 }
 0x18e   : > { %v545_v36 = vpop.permute.xlu1 %544 }
 0x18f   : > { %v547_v48 = vsel %vm381_vm4, %v543_v57, %v545_v36 }
 0x190   : > { %v551_v53 = vadd.f32 %v547_v48, %v529_v50 }
 0x192   : > { %v563_v38 = vpop.permute.xlu1 %562 }
 0x193   : > { %v568_v25 = vsel %vm404_vm5, %v563_v38, %v565_v23 }
 0x194   : > { %v572_v30 = vadd.f32 %v568_v25, %v550_v47 }
 0x196   : > { %v567_v51 = vpop.permute.xlu1 %566 }
 0x197   : > { %v569_v58 = vsel %vm404_vm5, %v565_v23, %v567_v51 }
 0x198   : > { %v573_v60 = vadd.f32 %v569_v58, %v551_v53 }
 0x19a   : > { %v587_v61 = vpop.permute.xlu1 %586 }
 0x19b   : > { %v590_v62 = vsel %vm427_vm6, %v585_v44, %v587_v61  ;;  %v591_v63 = vsel %vm427_vm6, %v587_v61, %v589_v55 }
 0x19c   : > { %v594_v1 = vadd.f32 %v590_v62, %v572_v30  ;;  %v595_v27 = vadd.f32 %v591_v63, %v573_v60 }
 0x19e   : > { %v602_v2 = vadd.f32 %v1398_v16, %v594_v1  ;;  %v603_v3 = vadd.f32 %v1398_v16, %v595_v27 }
 0x1a0   : > { %v606_v4 = vmin.f32 %v602_v2, 0.0  ;;  %v607_v5 = vmin.f32 %v603_v3, 0.0  ;;  %vm604_vm8 = vcmp.gt.f32.partialorder %v602_v2, 0.0  ;;  %vm605_vm10 = vcmp.gt.f32.partialorder %v603_v3, 0.0 }
 0x1a2   : > { %v608_v35 = vmul.f32 1.442695, %v606_v4  ;;  %v610_v7 = vmul.f32 1.442695, %v607_v5 }
 0x1a4   : > { %957 = vpow2.f32 %v608_v35 }
 0x1a5   : > { %959 = vpow2.f32 %v610_v7 }
 0x1ae   : > { %v958_v10 = vpop.eup %957 }
 0x1af   : > { %v960_v39 = vpop.eup %959  ;;  %v852_v46 = vadd.f32 -1.0, %v958_v10 }
 0x1b0   : > { %v853_v16 = vadd.f32 -1.0, %v960_v39 }
 0x1b1   : > { %v614_v13 = vsel %vm604_vm8, %v602_v2, %v852_v46 }
 0x1b2   : > { %v615_v33 = vsel %vm605_vm10, %v603_v3, %v853_v16  ;;  %v740_v14 = vadd.f32 %v738_v12, %v614_v13 }
 0x1b3   : > { %v741_v15 = vadd.f32 %v739_v31, %v615_v33 }
 0x1b4   : > { %742 = vst [vmem:[%s255_s26] sm:$0xff] %v740_v14 }
 0x1b5   : > { %743 = vst [vmem:[%s255_s26 + $0x8] sm:$0xff] %v741_v15 }
 0x1b6   : > { %1004 = shalt.err (!%p1001_p5)
}
 0x1b7   : > { %s1005_s13 = scalar_lea.hbm %s1444_s9, 256  ;;  %s1009_s29 = scalar_lea.hbm %s1493_s5, 512 }
 0x1b8   : > { %p1006_p8 = scmp.ne.s32.totalorder %s1444_s9, %s1005_s13  ;;  %p1010_p1 = scmp.lt.u32.totalorder %s1444_s9, %s1493_s5 }
 0x1b9   : > { %p1011_p3 = scmp.lt.u32.totalorder %s1009_s29, %s1005_s13  ;;  %p1013_p11 = scmp.lt.u32.totalorder %s1005_s13, %s1444_s9 }
 0x1ba   : > { %p1007_p9 = pnand %p1006_p8, %p1502_p12 }
 0x1bb   : > { %p1012_p6 = por %p1011_p3, %p1010_p1 }
 0x1bc   : > { %p1008_p0 = pneg %p1007_p9 }
 0x1bd   : > { %p1014_p13 = por %p1013_p11, %p1012_p6 }
 0x1bf   : > { %p1015_p7 = pnand %p1014_p13, %p1008_p0 }
 0x1c1   : > { %1018 = shalt.err (!%p1015_p7)
}
 0x1c2   : > { %866 = dma.vmem_to_hbm [thread:$0]  (%p1502_p12), %s1446_s28, 256, %s1444_s9, %s745_s22  }
 0x1c3 PF: > { %s771_s16 = sand.u32 1, %s1045_s18   ;;  %p1503_p10 = scmp.ne.s32.totalorder %s1498_s6, 0 }
 0x1c4   : > { %p1504_p2 = scmp.ge.s32.totalorder %s1057_s21, 2  ;;  %s772_s26 = scalar_lea.sflag [#allocation4], %s771_s16 }
 0x1c6   : > { %p873_p4 = pnand %p1504_p2, %p1503_p10 }
 0x1c8   : > { %1040 = dma.done.wait (!%p873_p4), %s772_s26, 256  }
 0x1c9   : > { %1042 = vsyncadd (!%p873_p4), %s772_s26, 4294967040  ;;  %p18_p5 = scmp.ge.s32.totalorder %s1139_s24, 4   ;;  %s1505_s18 = smov %s1049_s19 }
 0x1ca   : > { %s1506_s19 = smov %s1053_s20  ;;  %s1507_s20 = smov %s1151_s27 }
 0x1cb   : > { %s1508_s21 = smov %s1139_s24  ;;  %20 = sbr.rel (!%p18_p5) target bundleno = 5 (0x5), region = 88 }
 0x1d2   :  { %777 = vsyncpa [#allocation3], 1 }
 0x1d3   :  { %779 = vsyncpa [#allocation3 + $0x1], 1 }
 0x1d4   :  { %780 = vsyncpa [#allocation4], 1 }
 0x1d5   :  { %782 = vsyncpa [#allocation4 + $0x1], 1 }

</bundles_post_ra>
